<compile_context>
chip_gen: v7x
topology: tpu7x:2x2x1
jax: 0.10.0
libtpu: 0.0.40
codegen_flags: <defaults>
</compile_context>

<pallas_src>
import functools

import jax
import jax.numpy as jnp
from jax.experimental import pallas as pl
from jax.experimental.pallas import tpu as pltpu


# ----------------------------- Pallas kernel -----------------------------

def _attention_kernel(tgt_ref, ctx_lt_ref, ctx_tl_ref, wc_tf_ref, wc_ft_ref,
                      mask_ref, wctx_ref, attn_ref, *, batch):
    """Word-level attention for one (batch element, query tile).

    tgt_ref   : (1, F, TQ) f32   image features, channels-first (cast in-kernel)
    ctx_lt_ref: (1, L, T)  bf16  word features, sourceL-major
    ctx_tl_ref: (1, T, L)  bf16  word features, t_dim-major
    wc_tf_ref : (T, F)     bf16  conv_context 1x1 weight, transposed
    wc_ft_ref : (F, T)     bf16  conv_context 1x1 weight
    mask_ref  : (1, L, Brp) bf16 0/1 residue mask table (Brp = pad8(batch))
    wctx_ref  : (1, F, TQ)       weightedContext output (bf16 by default)
    attn_ref  : (1, L, TQ)       attention output, sourceL-major
    batch     : static Python int, true batch size B (for the q % B quirk)
    """
    L = attn_ref.shape[1]
    TQ = attn_ref.shape[2]
    Brp = mask_ref.shape[2]
    q_start = pl.program_id(1) * TQ

    # 1x1 projection of the word features.  Tiny (~L*T*F MACs), recomputed per
    # tile so there is no cross-tile scratch dependency and both grid axes can
    # be "parallel" (keeps both TensorCores busy on v7x even for B == 1).
    src_lf = jnp.dot(ctx_lt_ref[0], wc_tf_ref[...],
                     preferred_element_type=jnp.float32).astype(jnp.bfloat16)   # (L, F)
    src_fl = jnp.dot(wc_ft_ref[...], ctx_tl_ref[0],
                     preferred_element_type=jnp.float32).astype(jnp.bfloat16)   # (F, L)

    # Cast the big input in-kernel: HBM stream is a single 4 B/elem f32 read.
    tgt = tgt_ref[0].astype(jnp.bfloat16)                                       # (F, TQ)

    # scores[l, q] = sum_f src[f, l] * tgt[f, q]   (standard MXU orientation)
    scores = jnp.dot(src_lf, tgt, preferred_element_type=jnp.float32)           # (L, TQ)

    # PyTorch quirk: attn.view(B*Q, L) row r = b*Q + q is masked with
    # mask[(b*Q + q) % B].  mask_ref[b, l, r] already folds in b*Q, so the mask
    # only depends on r = q_global % B -- rebuild it from iota + a tiny one-hot
    # dot instead of streaming a (B, L, Q) bias from HBM.
    q_iota = jax.lax.broadcasted_iota(jnp.int32, (Brp, TQ), 1) + q_start
    r_iota = jax.lax.broadcasted_iota(jnp.int32, (Brp, TQ), 0)
    onehot = ((q_iota % batch) == r_iota).astype(jnp.bfloat16)                  # (Brp, TQ)
    masked = jnp.dot(mask_ref[0], onehot, preferred_element_type=jnp.float32)   # (L, TQ)
    # Finite -1e30 instead of -inf: fully masked columns degrade to a uniform
    # distribution instead of PyTorch's NaN.  exp(-1e30 - m) == 0 in f32.
    scores = jnp.where(masked > 0.5, jnp.float32(-1e30), scores)

    # Softmax over sourceL (sublane axis, Q stays in lanes).
    m = jnp.max(scores, axis=0, keepdims=True)
    p = jnp.exp(scores - m)
    denom = jnp.sum(p, axis=0, keepdims=True)
    attn = p * pl.reciprocal(denom, approx=False)                               # (L, TQ)
    attn_ref[0] = attn.astype(attn_ref.dtype)

    # weightedContext[f, q] = sum_l src[f, l] * attn[l, q]
    wctx = jnp.dot(src_fl, attn.astype(jnp.bfloat16),
                   preferred_element_type=jnp.float32)                          # (F, TQ)
    wctx_ref[0] = wctx.astype(wctx_ref.dtype)


# ----------------------------- wrapper -----------------------------

def _pick_q_tile(q):
    for cand in (4096, 2048, 1024, 512, 256, 128):
        if q >= cand and q % cand == 0:
            return cand
    return q                       # small / odd Q: one full-extent tile


def attention_forward(x_nchw, context, mask, wc, out_dtype=jnp.bfloat16):
    """AttentionModule.forward.

    x_nchw : (B, F, H, W) image features (f32)
    context: (B, T, L)    word features (t_dim x sourceL)
    mask   : (B, L) bool  True = padded word
    wc     : (F, T)       conv_context weight (1x1 conv, no bias)
    returns (weightedContext (B, F, H, W), attn (B, L, H, W)) in out_dtype.
    out_dtype defaults to bf16 (halves output HBM traffic); pass jnp.float32 to
    have the kernel store f32 directly.
    """
    B, F, H, W = x_nchw.shape
    T, L = context.shape[1], context.shape[2]
    Q = H * W

    # Channels-first flattening: pure reshape, no transpose, no dtype pass.
    target = x_nchw.reshape(B, F, Q)                        # (B, F, Q) f32
    ctx_tl = context.astype(jnp.bfloat16)                   # (B, T, L)  tiny
    ctx_lt = jnp.transpose(ctx_tl, (0, 2, 1))               # (B, L, T)  tiny
    wc_ft = wc.astype(jnp.bfloat16)                         # (F, T)     tiny
    wc_tf = wc_ft.T                                         # (T, F)     tiny

    # Residue mask table (B, L, Brp): mask_tab[b, l, r] = mask[(b*Q + r) % B, l]
    # for r < B, 0 for the sublane padding r >= B.
    brp = ((B + 7) // 8) * 8
    r = jnp.arange(brp)
    rows = (jnp.arange(B)[:, None] * Q + r[None, :]) % B                 # (B, Brp)
    mask_tab = jnp.transpose(mask[rows], (0, 2, 1)) & (r < B)[None, None, :]
    mask_tab = mask_tab.astype(jnp.bfloat16)                             # (B, L, Brp)

    tq = _pick_q_tile(Q)
    nq = Q // tq

    wctx, attn = pl.pallas_call(
        functools.partial(_attention_kernel, batch=B),
        out_shape=(jax.ShapeDtypeStruct((B, F, Q), out_dtype),
                   jax.ShapeDtypeStruct((B, L, Q), out_dtype)),
        grid=(B, nq),
        in_specs=[
            pl.BlockSpec((1, F, tq), lambda b, q: (b, 0, q)),   # target tile (f32)
            pl.BlockSpec((1, L, T), lambda b, q: (b, 0, 0)),    # words, L-major
            pl.BlockSpec((1, T, L), lambda b, q: (b, 0, 0)),    # words, T-major
            pl.BlockSpec((T, F), lambda b, q: (0, 0)),          # weight^T
            pl.BlockSpec((F, T), lambda b, q: (0, 0)),          # weight
            pl.BlockSpec((1, L, brp), lambda b, q: (b, 0, 0)),  # residue mask table
        ],
        out_specs=(pl.BlockSpec((1, F, tq), lambda b, q: (b, 0, q)),
                   pl.BlockSpec((1, L, tq), lambda b, q: (b, 0, q))),
        compiler_params=pltpu.CompilerParams(
            dimension_semantics=("parallel", "parallel")),
    )(target, ctx_lt, ctx_tl, wc_tf, wc_ft, mask_tab)

    return wctx.reshape(B, F, H, W), attn.reshape(B, L, H, W)


# ----------------------------- reference -----------------------------

def reference_forward(x, context, mask, wc, matmul_dtype=jnp.float32):
    """Pure-JAX mirror of AttentionModule.forward.

    matmul_dtype=jnp.bfloat16 reproduces the kernel's precision policy
    (bf16 matmul operands, f32 accumulation) for a tight correctness check.
    """
    B, F, H, W = x.shape
    L = context.shape[2]
    Q = H * W
    f32 = jnp.float32
    tgt = x.reshape(B, F, Q).astype(matmul_dtype)
    ctx = context.astype(matmul_dtype)
    wcd = wc.astype(matmul_dtype)
    sourceT = jnp.einsum('ft,btl->bfl', wcd, ctx,
                         preferred_element_type=f32)                   # (B, F, L)
    attn = jnp.einsum('bfq,bfl->bql', tgt, sourceT.astype(matmul_dtype),
                      preferred_element_type=f32)                      # (B, Q, L)
    rows = (jnp.arange(B)[:, None] * Q + jnp.arange(Q)[None, :]) % B
    attn = jnp.where(mask[rows], f32(-1e30), attn)
    attn = jax.nn.softmax(attn, axis=-1)
    attnT = jnp.transpose(attn, (0, 2, 1))                             # (B, L, Q)
    wctx = jnp.einsum('bfl,blq->bfq', sourceT.astype(matmul_dtype),
                      attnT.astype(matmul_dtype),
                      preferred_element_type=f32)                      # (B, F, Q)
    return wctx.reshape(B, F, H, W), attnT.reshape(B, L, H, W)


# ----------------------------- main -----------------------------

if __name__ == "__main__":
    # batch, in_features, t_dim, spatial, sourceL
    B, F, T, H, W, L = 2, 32, 64, 16, 16, 8

    key = jax.random.PRNGKey(0)
    kx, kc, kw = jax.random.split(key, 3)
    x = jax.random.normal(kx, (B, F, H, W), jnp.float32)             # NCHW
    context = jax.random.normal(kc, (B, T, L), jnp.float32)          # B x t_dim x sourceL
    lengths = jnp.array([5, 7])
    mask = jnp.arange(L)[None, :] >= lengths[:, None]                # (B, L), True = pad
    wc = jax.random.normal(kw, (F, T), jnp.float32) / jnp.sqrt(T)    # conv_context weight

    fwd = jax.jit(attention_forward)
    wctx, attn = fwd(x, context, mask, wc)
    wctx, attn = jax.block_until_ready((wctx, attn))

    assert wctx.shape == (B, F, H, W), wctx.shape
    assert attn.shape == (B, L, H, W), attn.shape

    wctx_f32 = wctx.astype(jnp.float32)
    attn_f32 = attn.astype(jnp.float32)

    # Tight check against a reference matching the kernel's precision policy
    # (bf16 matmul operands, f32 accumulation): catches logic / masking / layout
    # bugs; the residual gap is bf16 output rounding.
    wctx_m, attn_m = reference_forward(x, context, mask, wc,
                                       matmul_dtype=jnp.bfloat16)
    assert float(jnp.max(jnp.abs(wctx_f32 - wctx_m))) < 1e-1
    assert float(jnp.max(jnp.abs(attn_f32 - attn_m))) < 3e-2

    # Attention must be (approximately) normalized over sourceL.
    assert float(jnp.max(jnp.abs(jnp.sum(attn_f32, axis=1) - 1.0))) < 2e-2

    # Loose sanity check against full-f32 semantics (gap is pure bf16
    # quantization of matmul inputs/outputs, already bounded by the tight check).
    wctx_r, attn_r = reference_forward(x, context, mask, wc,
                                       matmul_dtype=jnp.float32)
    assert float(jnp.max(jnp.abs(wctx_f32 - wctx_r))) < 4e-1
    assert float(jnp.max(jnp.abs(attn_f32 - attn_r))) < 1.5e-1

    print("KERNEL_OK")
</pallas_src>

<mosaic_0001>
module attributes {stable_mosaic.version = 11 : i64} {
  func.func @_attention_kernel(%arg0: i32, %arg1: i32, %arg2: memref<1x32x256xf32, #tpu.memory_space<vmem>>, %arg3: memref<1x8x64xbf16, #tpu.memory_space<vmem>>, %arg4: memref<1x64x8xbf16, #tpu.memory_space<vmem>>, %arg5: memref<64x32xbf16, #tpu.memory_space<vmem>>, %arg6: memref<32x64xbf16, #tpu.memory_space<vmem>>, %arg7: memref<1x8x8xbf16, #tpu.memory_space<vmem>>, %arg8: memref<1x32x256xbf16, #tpu.memory_space<vmem>>, %arg9: memref<1x8x256xbf16, #tpu.memory_space<vmem>>) attributes {dimension_semantics = [#tpu.dimension_semantics<parallel>, #tpu.dimension_semantics<parallel>], iteration_bounds = array<i64: 2, 1>, scalar_prefetch = 0 : i64, scratch_operands = 0 : i64, tpu.core_type = #tpu.core_type<tc>, window_params = [{transform_indices = @transform_0, window_bounds = array<i64: 1, 32, 256>}, {transform_indices = @transform_1, window_bounds = array<i64: 1, 8, 64>}, {transform_indices = @transform_2, window_bounds = array<i64: 1, 64, 8>}, {pipeline_mode = #tpu.pipeline_mode<synchronous>, transform_indices = @transform_3, window_bounds = array<i64: 64, 32>}, {pipeline_mode = #tpu.pipeline_mode<synchronous>, transform_indices = @transform_4, window_bounds = array<i64: 32, 64>}, {transform_indices = @transform_5, window_bounds = array<i64: 1, 8, 8>}, {transform_indices = @transform_6, window_bounds = array<i64: 1, 32, 256>}, {transform_indices = @transform_7, window_bounds = array<i64: 1, 8, 256>}]} {
    %c256_i32 = arith.constant 256 : i32
    %0 = arith.muli %arg1, %c256_i32 : i32
    %c0 = arith.constant 0 : index
    %c0_0 = arith.constant 0 : index
    %c0_1 = arith.constant 0 : index
    %1 = vector.load %arg3[%c0, %c0_0, %c0_1] : memref<1x8x64xbf16, #tpu.memory_space<vmem>>, vector<1x8x64xbf16>
    %2 = vector.shape_cast %1 : vector<1x8x64xbf16> to vector<8x64xbf16>
    %c0_2 = arith.constant 0 : index
    %c0_3 = arith.constant 0 : index
    %3 = vector.load %arg5[%c0_2, %c0_3] : memref<64x32xbf16, #tpu.memory_space<vmem>>, vector<64x32xbf16>
    %cst = arith.constant dense<0.000000e+00> : vector<8x32xf32>
    %4 = tpu.matmul %2, %3, %cst {dimension_numbers = #tpu.dot_dimension_numbers<[1], [0], [0], [1], [0, 0, 1, 1], [], []>} : vector<8x64xbf16>, vector<64x32xbf16>, vector<8x32xf32> -> vector<8x32xf32>
    %5 = arith.truncf %4 : vector<8x32xf32> to vector<8x32xbf16>
    %c0_4 = arith.constant 0 : index
    %c0_5 = arith.constant 0 : index
    %6 = vector.load %arg6[%c0_4, %c0_5] : memref<32x64xbf16, #tpu.memory_space<vmem>>, vector<32x64xbf16>
    %c0_6 = arith.constant 0 : index
    %c0_7 = arith.constant 0 : index
    %c0_8 = arith.constant 0 : index
    %7 = vector.load %arg4[%c0_6, %c0_7, %c0_8] : memref<1x64x8xbf16, #tpu.memory_space<vmem>>, vector<1x64x8xbf16>
    %8 = vector.shape_cast %7 : vector<1x64x8xbf16> to vector<64x8xbf16>
    %cst_9 = arith.constant dense<0.000000e+00> : vector<32x8xf32>
    %9 = tpu.matmul %6, %8, %cst_9 {dimension_numbers = #tpu.dot_dimension_numbers<[1], [0], [0], [1], [0, 0, 1, 1], [], []>} : vector<32x64xbf16>, vector<64x8xbf16>, vector<32x8xf32> -> vector<32x8xf32>
    %10 = arith.truncf %9 : vector<32x8xf32> to vector<32x8xbf16>
    %c0_10 = arith.constant 0 : index
    %c0_11 = arith.constant 0 : index
    %c0_12 = arith.constant 0 : index
    %11 = vector.load %arg2[%c0_10, %c0_11, %c0_12] : memref<1x32x256xf32, #tpu.memory_space<vmem>>, vector<1x32x256xf32>
    %12 = vector.shape_cast %11 : vector<1x32x256xf32> to vector<32x256xf32>
    %13 = arith.truncf %12 : vector<32x256xf32> to vector<32x256xbf16>
    %cst_13 = arith.constant dense<0.000000e+00> : vector<8x256xf32>
    %14 = tpu.matmul %5, %13, %cst_13 {dimension_numbers = #tpu.dot_dimension_numbers<[1], [0], [0], [1], [0, 0, 1, 1], [], []>} : vector<8x32xbf16>, vector<32x256xbf16>, vector<8x256xf32> -> vector<8x256xf32>
    %15 = tpu.iota {dimensions = array<i32: 1>} : vector<8x256xi32>
    %16 = vector.broadcast %0 : i32 to vector<8x256xi32>
    %17 = arith.addi %15, %16 : vector<8x256xi32>
    %18 = tpu.iota {dimensions = array<i32: 0>} : vector<8x256xi32>
    %c2_i32 = arith.constant 2 : i32
    %c0_i32 = arith.constant 0 : i32
    %19 = arith.cmpi eq, %c2_i32, %c0_i32 : i32
    %c1_i32 = arith.constant 1 : i32
    %20 = arith.select %19, %c1_i32, %c2_i32 : i32
    %21 = vector.broadcast %20 : i32 to vector<8x256xi32>
    %22 = arith.remsi %17, %21 : vector<8x256xi32>
    %c0_i32_14 = arith.constant 0 : i32
    %23 = vector.broadcast %c0_i32_14 : i32 to vector<8x256xi32>
    %24 = arith.cmpi ne, %22, %23 : vector<8x256xi32>
    %c0_i32_15 = arith.constant 0 : i32
    %25 = vector.broadcast %c0_i32_15 : i32 to vector<8x256xi32>
    %26 = arith.cmpi slt, %22, %25 : vector<8x256xi32>
    %c0_i32_16 = arith.constant 0 : i32
    %27 = arith.cmpi slt, %20, %c0_i32_16 : i32
    %28 = vector.broadcast %27 : i1 to vector<8x256xi1>
    %29 = vector.broadcast %28 : vector<8x256xi1> to vector<8x256xi1>
    %30 = arith.xori %26, %29 : vector<8x256xi1>
    %31 = arith.andi %30, %24 : vector<8x256xi1>
    %32 = vector.broadcast %20 : i32 to vector<8x256xi32>
    %33 = arith.addi %22, %32 : vector<8x256xi32>
    %34 = arith.select %31, %33, %22 : vector<8x256xi1>, vector<8x256xi32>
    %35 = arith.cmpi eq, %34, %18 : vector<8x256xi32>
    %36 = arith.extui %35 : vector<8x256xi1> to vector<8x256xi32>
    %37 = arith.sitofp %36 : vector<8x256xi32> to vector<8x256xf32>
    %38 = arith.truncf %37 : vector<8x256xf32> to vector<8x256xbf16>
    %c0_17 = arith.constant 0 : index
    %c0_18 = arith.constant 0 : index
    %c0_19 = arith.constant 0 : index
    %39 = vector.load %arg7[%c0_17, %c0_18, %c0_19] : memref<1x8x8xbf16, #tpu.memory_space<vmem>>, vector<1x8x8xbf16>
    %40 = vector.shape_cast %39 : vector<1x8x8xbf16> to vector<8x8xbf16>
    %cst_20 = arith.constant dense<0.000000e+00> : vector<8x256xf32>
    %41 = tpu.matmul %40, %38, %cst_20 {dimension_numbers = #tpu.dot_dimension_numbers<[1], [0], [0], [1], [0, 0, 1, 1], [], []>} : vector<8x8xbf16>, vector<8x256xbf16>, vector<8x256xf32> -> vector<8x256xf32>
    %cst_21 = arith.constant 5.000000e-01 : f32
    %42 = vector.broadcast %cst_21 : f32 to vector<8x256xf32>
    %43 = arith.cmpf ogt, %41, %42 : vector<8x256xf32>
    %cst_22 = arith.constant -1.000000e+30 : f32
    %44 = vector.broadcast %cst_22 : f32 to vector<8x256xf32>
    %45 = arith.select %43, %44, %14 : vector<8x256xi1>, vector<8x256xf32>
    %cst_23 = arith.constant dense<0xFF800000> : vector<256xf32>
    %46 = vector.multi_reduction <maximumf>, %45, %cst_23 [0] : vector<8x256xf32> to vector<256xf32>
    %47 = vector.shape_cast %46 : vector<256xf32> to vector<1x256xf32>
    %48 = vector.broadcast %47 : vector<1x256xf32> to vector<8x256xf32>
    %49 = arith.subf %45, %48 : vector<8x256xf32>
    %50 = math.exp %49 : vector<8x256xf32>
    %cst_24 = arith.constant dense<0.000000e+00> : vector<256xf32>
    %51 = vector.multi_reduction <add>, %50, %cst_24 [0] : vector<8x256xf32> to vector<256xf32>
    %52 = vector.shape_cast %51 : vector<256xf32> to vector<1x256xf32>
    %53 = tpu.reciprocal %52 : vector<1x256xf32> -> vector<1x256xf32>
    %54 = vector.broadcast %53 : vector<1x256xf32> to vector<8x256xf32>
    %55 = arith.mulf %50, %54 : vector<8x256xf32>
    %56 = arith.truncf %55 : vector<8x256xf32> to vector<8x256xbf16>
    %c0_25 = arith.constant 0 : index
    %c0_26 = arith.constant 0 : index
    %c0_27 = arith.constant 0 : index
    %57 = vector.load %arg9[%c0_25, %c0_26, %c0_27] : memref<1x8x256xbf16, #tpu.memory_space<vmem>>, vector<1x8x256xbf16>
    %58 = vector.shape_cast %57 : vector<1x8x256xbf16> to vector<8x256xbf16>
    %59 = vector.shape_cast %56 : vector<8x256xbf16> to vector<1x8x256xbf16>
    tpu.vector_store %arg9[%c0_25, %c0_26, %c0_27], %59 {strides = array<i32>} : memref<1x8x256xbf16, #tpu.memory_space<vmem>>, vector<1x8x256xbf16>,
    %60 = arith.truncf %55 : vector<8x256xf32> to vector<8x256xbf16>
    %cst_28 = arith.constant dense<0.000000e+00> : vector<32x256xf32>
    %61 = tpu.matmul %10, %60, %cst_28 {dimension_numbers = #tpu.dot_dimension_numbers<[1], [0], [0], [1], [0, 0, 1, 1], [], []>} : vector<32x8xbf16>, vector<8x256xbf16>, vector<32x256xf32> -> vector<32x256xf32>
    %62 = arith.truncf %61 : vector<32x256xf32> to vector<32x256xbf16>
    %c0_29 = arith.constant 0 : index
    %c0_30 = arith.constant 0 : index
    %c0_31 = arith.constant 0 : index
    %63 = vector.load %arg8[%c0_29, %c0_30, %c0_31] : memref<1x32x256xbf16, #tpu.memory_space<vmem>>, vector<1x32x256xbf16>
    %64 = vector.shape_cast %63 : vector<1x32x256xbf16> to vector<32x256xbf16>
    %65 = vector.shape_cast %62 : vector<32x256xbf16> to vector<1x32x256xbf16>
    tpu.vector_store %arg8[%c0_29, %c0_30, %c0_31], %65 {strides = array<i32>} : memref<1x32x256xbf16, #tpu.memory_space<vmem>>, vector<1x32x256xbf16>,
    return
  }
  func.func @transform_0(%arg0: i32, %arg1: i32) -> (i32, i32, i32) {
    %c0_i32 = arith.constant 0 : i32
    %c0_i32_0 = arith.constant 0 : i32
    return %arg0, %c0_i32, %arg1 : i32, i32, i32
  }
  func.func @transform_1(%arg0: i32, %arg1: i32) -> (i32, i32, i32) {
    %c0_i32 = arith.constant 0 : i32
    %c0_i32_0 = arith.constant 0 : i32
    %c0_i32_1 = arith.constant 0 : i32
    return %arg0, %c0_i32, %c0_i32_0 : i32, i32, i32
  }
  func.func @transform_2(%arg0: i32, %arg1: i32) -> (i32, i32, i32) {
    %c0_i32 = arith.constant 0 : i32
    %c0_i32_0 = arith.constant 0 : i32
    %c0_i32_1 = arith.constant 0 : i32
    return %arg0, %c0_i32, %c0_i32_0 : i32, i32, i32
  }
  func.func @transform_3(%arg0: i32, %arg1: i32) -> (i32, i32) {
    %c0_i32 = arith.constant 0 : i32
    %c0_i32_0 = arith.constant 0 : i32
    %c0_i32_1 = arith.constant 0 : i32
    return %c0_i32, %c0_i32_0 : i32, i32
  }
  func.func @transform_4(%arg0: i32, %arg1: i32) -> (i32, i32) {
    %c0_i32 = arith.constant 0 : i32
    %c0_i32_0 = arith.constant 0 : i32
    %c0_i32_1 = arith.constant 0 : i32
    return %c0_i32, %c0_i32_0 : i32, i32
  }
  func.func @transform_5(%arg0: i32, %arg1: i32) -> (i32, i32, i32) {
    %c0_i32 = arith.constant 0 : i32
    %c0_i32_0 = arith.constant 0 : i32
    %c0_i32_1 = arith.constant 0 : i32
    return %arg0, %c0_i32, %c0_i32_0 : i32, i32, i32
  }
  func.func @transform_6(%arg0: i32, %arg1: i32) -> (i32, i32, i32) {
    %c0_i32 = arith.constant 0 : i32
    %c0_i32_0 = arith.constant 0 : i32
    return %arg0, %c0_i32, %arg1 : i32, i32, i32
  }
  func.func @transform_7(%arg0: i32, %arg1: i32) -> (i32, i32, i32) {
    %c0_i32 = arith.constant 0 : i32
    %c0_i32_0 = arith.constant 0 : i32
    return %arg0, %c0_i32, %arg1 : i32, i32, i32
  }
}

</mosaic_0001>

<bundles_post_ra>
// kernel: attention_forward.1
= control target key start
LH: loop header
LB: loop body
LE: loop exit
PB: predicated region body
PF: predicated region fallthrough
CT: control target
= control target key end

     0   :  { %s1241_s24 = smov 0   ;;  %s1243_s25 = smov 0   ;;  %s1351_s0 = inlined_call_operand.vmem [shape: f32[2,32,256], index: 0, kind: input, shape index: {}]   ;;  %s1352_s1 = inlined_call_operand.vmem [shape: bf16[2,8,64], index: 1, kind: input, shape index: {}]   ;;  %s1353_s2 = inlined_call_operand.vmem [shape: bf16[2,64,8], index: 2, kind: input, shape index: {}]   ;;  %s1354_s3 = inlined_call_operand.vmem [shape: bf16[64,32], index: 3, kind: input, shape index: {}]   ;;  %s1355_s4 = inlined_call_operand.vmem [shape: bf16[32,64], index: 4, kind: input, shape index: {}]   ;;  %s1356_s5 = inlined_call_operand.vmem [shape: bf16[2,8,8], index: 5, kind: input, shape index: {}]   ;;  %s1357_s6 = inlined_call_operand.vmem [shape: bf16[2,32,256], index: 6, kind: output, shape index: {0}]   ;;  %s1358_s7 = inlined_call_operand.vmem [shape: bf16[2,8,256], index: 7, kind: output, shape index: {1}]  }
   0x1   :  { %s1245_s26 = smov 0  }
   0x2 LB: > { %s30_s27 = sadd.s32 1, %s1192_s25  ;;  %p1046_p0 = scmp.ge.s32.totalorder %s1196_s26, 1  ;;  %s1196_s26 = sphi %s1245_s26, %s18_s26   ;;  %s1192_s25 = sphi %s1243_s25, %s1360_s25   ;;  %s1188_s24 = sphi %s1241_s24, %s1359_s24  }
   0x3   : > { %p32_p1 = scmp.ge.s32.totalorder %s30_s27, 2  ;;  %p291_p2 = scmp.lt.s32.totalorder %s1196_s26, 3 }
   0x5   : > { %s1362_s27 = smov (%p32_p1, %s30_s27), 0  ;;  %p292_p3 = pnand %p1046_p0, %p291_p2 }
   0x6   : > { %v1156_v0 = vld [vmem:[%s1354_s3] sm:$0xff] (!%p292_p3)   ;;  %v1198_v1 = vmov (!%p292_p3), 0.0   ;;  %v1157_v2 = vld [vmem:[%s1354_s3 + $0x8] sm:$0xff] (!%p292_p3)   ;;  %vm1199_vm0 = vmmov (!%p292_p3), 0   ;;  %p354_p4 = scmp.lt.s32.totalorder (!%p292_p3), %s1188_s24, 1  ;;  %vm431_vm1 = vcmask (!%p292_p3), 523264   ;;  %v636_v21 = vlaneseq (!%p292_p3) }
   0x7   : > { %295 = sbr.rel (%p292_p3) target bundleno = 744 (0x2e8), region = 44  ;;  %1105 = vmatprep.subr.bf16.mxu0 (!%p292_p3), %v1198_v1  ;;  %1113 = vmatprep.mubr.msk.bf16.mxu0 (!%p292_p3), %vm1199_vm0, %v1198_v1  ;;  %v1164_v3 = vld [vmem:[%s1355_s4] sm:$0xff] (!%p292_p3)   ;;  %v1158_v4 = vld [vmem:[%s1354_s3 + $0x10] sm:$0xff] (!%p292_p3)   ;;  %v1159_v5 = vld [vmem:[%s1354_s3 + $0x18] sm:$0xff] (!%p292_p3)   ;;  %v1200_v30 = vmov (!%p292_p3), 0   ;;  %vm681_vm4 = vcmask (!%p292_p3), 1043456  }
   0x8   : > { %1106 = vmatpush3.bf16.msra.mxu0 (!%p292_p3), %v1156_v0  ;;  %1125 = vmatprep.mubr.msk.bf16.mxu1 (!%p292_p3), %vm431_vm1, %v1164_v3  ;;  %v1165_v18 = vld [vmem:[%s1355_s4 + $0x8] sm:$0xff] (!%p292_p3)   ;;  %v637_v24 = vand.u32 (!%p292_p3), 127, %v636_v21  ;;  %v643_v27 = vshrl.u32 (!%p292_p3), %v636_v21, 7  ;;  %vm591_vm5 = vcmask (!%p292_p3), 261120   ;;  %vm677_vm6 = vcmask (!%p292_p3), 64512  }
   0x9   : > { %1107 = vmatprep.subr.bf16.mxu0 (!%p292_p3), %v1198_v1 }
   0xa   : > { %v638_v26 = vadd.s32 (!%p292_p3), 128, %v637_v24  ;;  %v648_v29 = vand.u32 (!%p292_p3), 1, %v637_v24 }
   0xc   : > { %1108 = vmatpush3.bf16.msra.mxu0 (!%p292_p3), %v1157_v2  ;;  %v655_v28 = vand.u32 (!%p292_p3), 1, %v638_v26  ;;  %vm668_vm3 = vcmp.eq.s32.totalorder (!%p292_p3), %v648_v29, %v643_v27 }
   0xd   : > { %1109 = vmatprep.subr.bf16.mxu0 (!%p292_p3), %v1198_v1  ;;  %v1071_v33 = vsel (!%p292_p3), %vm668_vm3, 1.0, %v1198_v1 }
   0xe   : > { %s1364_s24 = smov (!%p354_p4, %s1188_s24), 1  ;;  %vm669_vm2 = vcmp.eq.s32.totalorder %v655_v28, %v643_v27  ;;  %v674_v34 = vpack.c.bf16 %v1071_v33, %v1071_v33 }
   0xf   : > { %s1049_s13 = sshll.u32 %s1364_s24, 2  ;;  %s1086_s14 = sshll.u32 %s1364_s24, 5  ;;  %v1072_v31 = vsel %vm669_vm2, 1.0, %v1198_v1 }
  0x10   : > { %s371_s19 = scalar_lea.vmem %s1353_s2, %s1086_s14  ;;  %1110 = vmatpush3.bf16.msra.mxu0 %v1158_v4  ;;  %s366_s22 = scalar_lea.vmem %s1352_s1, %s1049_s13  ;;  %v675_v32 = vpack.c.bf16 %v1072_v31, %v1072_v31  ;;  %v683_v38 = vsel %vm681_vm4, %v674_v34, 0 }
  0x11   : > { %v1160_v6 = vld [vmem:[%s371_s19] sm:$0xff]   ;;  %1111 = vmatprep.subr.bf16.mxu0 %v1198_v1  ;;  %v1161_v7 = vld [vmem:[%s371_s19 + $0x8] sm:$0xff]   ;;  %s1085_s23 = sshll.u32 %s1364_s24, 6  ;;  %v1162_v9 = vld [vmem:[%s371_s19 + $0x10] sm:$0xff]   ;;  %s375_s12 = scalar_lea.vmem %s1356_s5, %s1049_s13 }
  0x12   : > { %1117 = vmatprep.subr.bf16.mxu1 %v1160_v6  ;;  %v398_v8 = vld [vmem:[%s366_s22] sm:$0xf]  ;;  %s361_s30 = scalar_lea.vmem %s1351_s0, %s1085_s23  ;;  %v1163_v10 = vld [vmem:[%s371_s19 + $0x18] sm:$0xff]   ;;  %s1088_s13 = sshll.u32 %s1364_s24, 3 }
  0x13   : > { %1118 = vmatpush3.bf16.msra.mxu1 %v1160_v6  ;;  %v580_v11 = vld [vmem:[%s361_s30 + $0x8] sm:$0xff]  ;;  %v582_v12 = vld [vmem:[%s361_s30 + $0x18] sm:$0xff]  ;;  %v579_v14 = vld [vmem:[%s361_s30] sm:$0xff]  ;;  %s394_s17 = scalar_lea.vmem %s1358_s7, %s1088_s13  ;;  %s384_s20 = scalar_lea.vmem %s1357_s6, %s1086_s14 }
  0x14   : > { %1112 = vmatpush3.bf16.msra.mxu0 %v1159_v5  ;;  %1119 = vmatprep.subr.bf16.mxu1 %v1161_v7  ;;  %v588_v13 = vpack.c.bf16 %v582_v12, %v580_v11  ;;  %v581_v15 = vld [vmem:[%s361_s30 + $0x10] sm:$0xff]  ;;  %v584_v16 = vld [vmem:[%s361_s30 + $0x28] sm:$0xff]  ;;  %v586_v17 = vld [vmem:[%s361_s30 + $0x38] sm:$0xff] }
  0x15   : > { %v587_v19 = vpack.c.bf16 %v581_v15, %v579_v14  ;;  %v590_v20 = vpack.c.bf16 %v586_v17, %v584_v16  ;;  %v583_v22 = vld [vmem:[%s361_s30 + $0x20] sm:$0xff]  ;;  %v585_v23 = vld [vmem:[%s361_s30 + $0x30] sm:$0xff] }
  0x16   : > { %v589_v25 = vpack.c.bf16 %v585_v23, %v583_v22  ;;  %v676_v41 = vld [vmem:[%s375_s12] sm:$0xf] }
  0x17   : > { %1114 = vmatmul.mubr.msk.bf16.vlgmr.msra.gmra.mrb[0].mxu0 %vm431_vm1, %v398_v8  ;;  %1120 = vmatpush3.bf16.msra.mxu1 %v1161_v7 }
  0x18   : > { %1121 = vmatprep.subr.bf16.mxu1 %v1162_v9  ;;  %820 = vmatprep.mubr.bf16.mxu0 %v1200_v30 }
  0x1b   : > { %1122 = vmatpush3.bf16.msra.mxu1 %v1162_v9 }
  0x1c   : > { %1123 = vmatprep.subr.bf16.mxu1 %v1163_v10 }
  0x1f   : > { %1124 = vmatpush3.bf16.msra.mxu1 %v1163_v10 }
  0x20   : > { %595 = vmatprep.subr.bf16.mxu1 %v588_v13 }
  0x22   : > { %1126 = vmatmul.mubr.msk.bf16.vlgmr.msra.gmra.mrb[0].mxu1 %vm431_vm1, %v1165_v18 }
  0x23   : > { %596 = vmatpush1.bf16.msra.mxu1 %v587_v19  ;;  %627 = vmatprep.mubr.bf16.mxu1 %v1200_v30 }
  0x24   : > { %597 = vmatprep.subr.bf16.mxu1 %v590_v20 }
  0x27   : > { %598 = vmatpush1.bf16.msra.mxu1 %v589_v25 }
  0x28   : > { %1073 = vmatprep.subr.msk.bf16.mxu1 %vm681_vm4, %v675_v32 }
  0xea   : > { %v469_v35 = vpop.f32.mrb[0].mxu0 }
  0xeb   : > { %v475_v36 = vpack.c.bf16 %v469_v35, %v469_v35  ;;  %v1115_v37 = vpop.f32.mrb[1].mxu0 }
  0xec   : > { %v472_v39 = vpop.f32.mrb[2].mxu0 }
  0xed   : > { %v1116_v40 = vpop.f32.mrb[3].mxu0  ;;  %1070 = vmatmul.mubr.msk.bf16.vlgmr.msra.gmra.mrb[4].mxu1 %vm591_vm5, %v475_v36 }
  0xee   : > { %689 = vmatpush1.bf16.msra.mxu1 %v683_v38  ;;  %720 = vmatprep.mubr.bf16.mxu1 %v1200_v30 }
  0xf5   : > { %1074 = vmatmul.mubr.msk.bf16.vlgmr.msra.gmra.mrb[8].mxu1 %vm677_vm6, %v676_v41  ;;  %v1316_v42 = vpop.f32.mrb[0].mxu1 }
  0xf6   : > { %v1318_v43 = vpop.f32.mrb[1].mxu1 }
  0xf7   : > { %v1320_v44 = vpop.f32.mrb[2].mxu1 }
  0xf8   : > { %v578_v45 = vpack.c.bf16 %v1320_v44, %v1316_v42  ;;  %v565_v46 = vpop.f32.mrb[3].mxu1 }
  0xf9   : > { %v577_v47 = vpack.c.bf16 %v565_v46, %v1318_v43 }
 0x1c0   : > { %v629_v48 = vpop.f32.mrb[4].mxu1 }
 0x1c1   : > { %v631_v49 = vpop.f32.mrb[5].mxu1 }
 0x1c2   : > { %v633_v50 = vpop.f32.mrb[6].mxu1 }
 0x1c3   : > { %v634_v51 = vpop.f32.mrb[7].mxu1 }
 0x1c8   : > { %v722_v52 = vpop.f32.mrb[8].mxu1 }
 0x1c9   : > { %vm729_vm7 = vcmp.gt.f32.partialorder %v722_v52, 0.5  ;;  %v724_v53 = vpop.f32.mrb[9].mxu1 }
 0x1ca   : > { %v731_v54 = vsel %vm729_vm7, -1e+30, %v629_v48  ;;  %vm730_vm8 = vcmp.gt.f32.partialorder %v724_v53, 0.5  ;;  %v726_v55 = vpop.f32.mrb[10].mxu1 }
 0x1cb   : > { %v733_v56 = vrot.slane %v731_v54, 4  ;;  %v732_v57 = vsel %vm730_vm8, -1e+30, %v631_v49  ;;  %v727_v58 = vpop.f32.mrb[11].mxu1 }
 0x1cc   : > { %v739_v59 = vrot.slane %v732_v57, 4 }
 0x1cd   : > { %v734_v60 = vmax.f32 %v731_v54, %v733_v56 }
 0x1ce   : > { %v740_v61 = vmax.f32 %v732_v57, %v739_v59 }
 0x1cf   : > { %v735_v62 = vrot.slane %v734_v60, 2 }
 0x1d0   : > { %v741_v63 = vrot.slane %v740_v61, 2 }
 0x1d1   : > { %v736_v0 = vmax.f32 %v734_v60, %v735_v62 }
 0x1d2   : > { %v742_v1 = vmax.f32 %v740_v61, %v741_v63 }
 0x1d3   : > { %v737_v2 = vrot.slane %v736_v0, 1 }
 0x1d4   : > { %v743_v3 = vrot.slane %v742_v1, 1 }
 0x1d5   : > { %v738_v4 = vmax.f32 %v736_v0, %v737_v2 }
 0x1d6   : > { %v744_v5 = vmax.f32 %v742_v1, %v743_v3 }
 0x1d7   : > { %v745_v6 = vsub.f32 %v731_v54, %v738_v4 }
 0x1d8   : > { %v746_v7 = vsub.f32 %v732_v57, %v744_v5 }
 0x1d9   : > { %v747_v8 = vmul.f32 1.442695, %v745_v6 }
 0x1da   : > { %v749_v9 = vmul.f32 1.442695, %v746_v7 }
 0x1db   : > { %1166 = vpow2.f32 %v747_v8 }
 0x1dc   : > { %1168 = vpow2.f32 %v749_v9 }
 0x1e5   : > { %v1167_v10 = vpop.eup %1166 }
 0x1e6   : > { %v1169_v11 = vpop.eup %1168  ;;  %v751_v12 = vrot.slane %v1167_v10, 4 }
 0x1e7   : > { %v757_v13 = vrot.slane %v1169_v11, 4 }
 0x1e8   : > { %v752_v14 = vadd.f32 %v1167_v10, %v751_v12 }
 0x1e9   : > { %v758_v15 = vadd.f32 %v1169_v11, %v757_v13 }
 0x1ea   : > { %v753_v16 = vrot.slane %v752_v14, 2 }
 0x1eb   : > { %v759_v17 = vrot.slane %v758_v15, 2 }
 0x1ec   : > { %v754_v18 = vadd.f32 %v753_v16, %v752_v14 }
 0x1ed   : > { %v760_v19 = vadd.f32 %v759_v17, %v758_v15 }
 0x1ee   : > { %v755_v20 = vrot.slane %v754_v18, 1 }
 0x1ef   : > { %v761_v21 = vrot.slane %v760_v19, 1 }
 0x1f0   : > { %v756_v22 = vadd.f32 %v755_v20, %v754_v18 }
 0x1f1   : > { %v762_v23 = vadd.f32 %v761_v21, %v760_v19 }
 0x1f2   : > { %1170 = vrcp.f32 %v756_v22 }
 0x1f3   : > { %1172 = vrcp.f32 %v762_v23 }
 0x1fc   : > { %v1171_v24 = vpop.eup %1170 }
 0x1fd   : > { %v1173_v25 = vpop.eup %1172  ;;  %v765_v26 = vmul.f32 %v1171_v24, %v1167_v10 }
 0x1fe   : > { %v766_v27 = vmul.f32 %v1173_v25, %v1169_v11 }
 0x1ff   : > { %v767_v28 = vpack.c.bf16 %v765_v26, %v765_v26 }
 0x200   : > { %v768_v29 = vpack.c.bf16 %v766_v27, %v766_v27  ;;  %v1089_v31 = vpack.c.bf16 %v766_v27, %v765_v26 }
 0x201   : > { %v783_v32 = vsel %vm681_vm4, %v767_v28, 0 }
 0x202   : > { %1076 = vmatprep.subr.msk.bf16.mxu0 %vm681_vm4, %v768_v29  ;;  %775 = vst [vmem:[%s394_s17] sm:$0xff] %v1089_v31 }
 0x203   : > { %789 = vmatpush1.bf16.msra.mxu0 %v783_v32 }
 0x206   : > { %1077 = vmatmul.mubr.msk.bf16.vlgmr.msra.gmra.mrb[4].mxu0 %vm677_vm6, %v577_v47 }
 0x207   : > { %830 = vmatprep.mubr.bf16.mxu0 %v1200_v30 }
 0x20e   : > { %1078 = vmatmul.mubr.msk.bf16.gmra.mrb[8].mxu0 %vm677_vm6, %v578_v45 }
 0x2d9   : > { %v822_v33 = vpop.f32.mrb[4].mxu0 }
 0x2da   : > { %v824_v34 = vpop.f32.mrb[5].mxu0 }
 0x2db   : > { %v1090_v35 = vpack.c.bf16 %v824_v34, %v822_v33  ;;  %v826_v36 = vpop.f32.mrb[6].mxu0 }
 0x2dc   : > { %v828_v37 = vpop.f32.mrb[7].mxu0 }
 0x2dd   : > { %865 = vst [vmem:[%s384_s20] sm:$0xff] %v1090_v35  ;;  %v1091_v38 = vpack.c.bf16 %v828_v37, %v826_v36 }
 0x2df   : > { %866 = vst [vmem:[%s384_s20 + $0x8] sm:$0xff] %v1091_v38 }
 0x2e1   : > { %v832_v39 = vpop.f32.mrb[8].mxu0 }
 0x2e2   : > { %v834_v30 = vpop.f32.mrb[9].mxu0 }
 0x2e3   : > { %v1092_v40 = vpack.c.bf16 %v834_v30, %v832_v39  ;;  %v836_v41 = vpop.f32.mrb[10].mxu0 }
 0x2e4   : > { %v838_v42 = vpop.f32.mrb[11].mxu0 }
 0x2e5   : > { %867 = vst [vmem:[%s384_s20 + $0x10] sm:$0xff] %v1092_v40  ;;  %v1093_v43 = vpack.c.bf16 %v838_v42, %v836_v41 }
 0x2e7   : > { %868 = vst [vmem:[%s384_s20 + $0x18] sm:$0xff] %v1093_v43 }
 0x2e8 PF: > { %s18_s26 = sadd.s32 1, %s1196_s26   ;;  %s1359_s24 = smov %s1192_s25 }
 0x2e9   : > { %p15_p5 = scmp.ge.s32.totalorder %s18_s26, 4   ;;  %s1360_s25 = smov %s1362_s27 }
 0x2eb   :  { %17 = sbr.rel (!%p15_p5) target bundleno = 2 (0x2), region = 95 }

</bundles_post_ra>
